<compile_context>
chip_gen: v7x
topology: tpu7x:2x2x1
jax: 0.10.0
libtpu: 0.0.40
codegen_flags: <defaults>
</compile_context>

<pallas_src>
import functools

import jax
import jax.numpy as jnp
import numpy as np
from jax.experimental import pallas as pl
from jax.experimental.pallas import tpu as pltpu

# MXU operand dtype. bfloat16 cuts MXU passes ~3x vs f32 on v5e/v6e/v7x; accumulation
# and the whole epilogue stay f32. Set to jnp.float32 to match the reference to 1e-4.
MXU_DTYPE = jnp.bfloat16


def _round_up(x, m):
    return (x + m - 1) // m * m


# ----------------------------------------------------------------------------
# Fused kernel body. Dropout2d(p=0.0) is the identity, so it is not materialized.
# Layout: rows = channels (sublanes), columns = flattened pixels m = n*H*W + h*W + w
# (lanes). Everything lane-dense; no transposes, no NHWC round trip.
# ----------------------------------------------------------------------------
def _vgg_block_kernel(x_ref, masks_ref, w1_ref, g1_ref, b1_ref,
                      w2_ref, g2_ref, b2_ref, out_ref, col_ref, *,
                      cin_p, cmid_p, shifts, inv_m, eps, slope):

    def build_col(src, cp):
        # col[k*cp + c, m] = src[c, m + dh*W + dw] masked to the image interior:
        # one XLU lane-roll by the static flattened tap offset + one VPU mask mul.
        for k, s in enumerate(shifts):
            rows = slice(k * cp, (k + 1) * cp)
            if s == 0:                                    # center tap: no roll, mask == 1
                col_ref[rows, :] = src
            else:
                shifted = pltpu.roll(src, s, axis=1)      # full-lane-width rotate
                col_ref[rows, :] = shifted * masks_ref[k:k + 1, :]

    def bn_lrelu(acc, g_ref, b_ref):
        # BatchNorm2d training mode: biased batch stats over m, centered variance,
        # one fused scale/shift, then LeakyReLU(0.1). All f32 (VPU/EUP-friendly on v5e).
        mean = jnp.sum(acc, axis=1, keepdims=True) * inv_m
        xc = acc - mean
        var = jnp.sum(xc * xc, axis=1, keepdims=True) * inv_m
        y = xc * (g_ref[...] * jax.lax.rsqrt(var + eps)) + b_ref[...]
        return jnp.where(y >= 0.0, y, slope * y)

    # --- stage 1: conv1 + bn1 + leaky_relu ---
    build_col(x_ref[...], cin_p)
    acc1 = jnp.dot(w1_ref[...], col_ref[0:9 * cin_p, :].astype(w1_ref.dtype),
                   preferred_element_type=jnp.float32)            # (Cmid_p, M)
    y1 = bn_lrelu(acc1, g1_ref, b1_ref)                           # stays in vregs (f32)

    # --- stage 2: conv2 + bn2 + leaky_relu (y1 never leaves channel-major form) ---
    build_col(y1, cmid_p)
    acc2 = jnp.dot(w2_ref[...], col_ref[0:9 * cmid_p, :].astype(w2_ref.dtype),
                   preferred_element_type=jnp.float32)            # (Cout_p, M)
    out_ref[...] = bn_lrelu(acc2, g2_ref, b2_ref)                 # lane-dense stores


# ----------------------------------------------------------------------------
# Channel-major fast path: x_cm is (Cin_p, M) f32, returns (Cout_p, M) f32, so
# chained VGGBlocks can skip all layout plumbing.
# ----------------------------------------------------------------------------
def _vgg_block_cm(x_cm, masks, w1t, g1, bt1, w2t, g2, bt2, *, n, h, w, dilation):
    cin_p = x_cm.shape[0]
    cmid_p = w1t.shape[0]
    cout_p = w2t.shape[0]
    m = n * h * w
    k_max = max(w1t.shape[1], w2t.shape[1])
    d = dilation

    # Static lane-roll amounts: out[m'] = src[m' + dh*W + dw]  =>  roll by -(dh*W+dw).
    shifts = []
    for k in range(9):
        kh, kw = divmod(k, 3)
        off = (kh - 1) * d * w + (kw - 1) * d
        shifts.append((-off) % m)

    kernel = functools.partial(
        _vgg_block_kernel, cin_p=cin_p, cmid_p=cmid_p, shifts=tuple(shifts),
        inv_m=1.0 / m, eps=1e-5, slope=0.1)

    return pl.pallas_call(
        kernel,
        out_shape=jax.ShapeDtypeStruct((cout_p, m), jnp.float32),   # lane-dense output
        in_specs=[pl.BlockSpec(memory_space=pltpu.MemorySpace.VMEM)] * 8,
        out_specs=pl.BlockSpec(memory_space=pltpu.MemorySpace.VMEM),
        scratch_shapes=[
            # im2col scratch; f32 so every (cp, M) tap store lands on aligned (8,128)
            # tiles, cast to MXU_DTYPE only at the dot.
            pltpu.VMEM((k_max, m), jnp.float32),
        ],
    )(x_cm, masks, w1t, g1, bt1, w2t, g2, bt2)


# ----------------------------------------------------------------------------
# NCHW in / NCHW out wrapper (jitted so the layout plumbing fuses into the call).
# ----------------------------------------------------------------------------
@functools.partial(jax.jit, static_argnames=("dilation",))
def vgg_block(x_nchw, params, *, dilation=1):
    n, cin, h, w = x_nchw.shape
    w1 = params["w1"]                       # (3, 3, Cin,  Cmid)  HWIO
    w2 = params["w2"]                       # (3, 3, Cmid, Cout)  HWIO
    cmid, cout = w1.shape[-1], w2.shape[-1]
    d = dilation
    cin_p, cmid_p, cout_p = _round_up(cin, 8), _round_up(cmid, 8), _round_up(cout, 8)
    m = n * h * w

    # NCHW -> channel-major (Cin_p, M): one XLA transpose, zero-padded channels.
    x_cm = x_nchw.astype(jnp.float32).reshape(n, cin, h * w)
    x_cm = jnp.pad(x_cm.transpose(1, 0, 2).reshape(cin, m), ((0, cin_p - cin), (0, 0)))

    # Per-tap boundary masks (static constants): 1.0 where (h+dh, w+dw) is in-bounds.
    hh = (np.arange(m) // w) % h
    ww = np.arange(m) % w
    masks_np = np.zeros((9, m), np.float32)
    for k in range(9):
        kh, kw = divmod(k, 3)
        dh, dw = (kh - 1) * d, (kw - 1) * d
        masks_np[k] = ((hh + dh >= 0) & (hh + dh < h) & (ww + dw >= 0) & (ww + dw < w))
    masks = jnp.asarray(masks_np)

    # Weights -> (C_out_p, 9*C_in_p), tap-major / input-channel-minor row order,
    # matching the roll-based col builder. Conv biases are dropped: (acc+b) - mean(acc+b)
    # == acc - mean(acc) and the variance is unchanged under training-mode BN.
    w1t = jnp.pad(w1, ((0, 0), (0, 0), (0, cin_p - cin), (0, cmid_p - cmid)))
    w1t = w1t.transpose(3, 0, 1, 2).reshape(cmid_p, 9 * cin_p).astype(MXU_DTYPE)
    w2t = jnp.pad(w2, ((0, 0), (0, 0), (0, cmid_p - cmid), (0, cout_p - cout)))
    w2t = w2t.transpose(3, 0, 1, 2).reshape(cout_p, 9 * cmid_p).astype(MXU_DTYPE)

    def _pad_col(v, cp):
        return jnp.pad(v.astype(jnp.float32), (0, cp - v.shape[0])).reshape(cp, 1)

    g1 = _pad_col(params["g1"], cmid_p)
    bt1 = _pad_col(params["bt1"], cmid_p)
    g2 = _pad_col(params["g2"], cout_p)
    bt2 = _pad_col(params["bt2"], cout_p)

    out_cm = _vgg_block_cm(x_cm, masks, w1t, g1, bt1, w2t, g2, bt2,
                           n=n, h=h, w=w, dilation=d)

    # (Cout_p, M) -> (N, Cout, H, W)
    return out_cm[:cout].reshape(cout, n, h, w).transpose(1, 0, 2, 3)


# ----------------------------------------------------------------------------
# Pure-JAX reference (mirrors the PyTorch module, including conv biases).
# ----------------------------------------------------------------------------
def _ref_stage(x_nchw, w_oihw, b, g, bt, *, dilation=1):
    pad = dilation
    y = jax.lax.conv_general_dilated(
        x_nchw, w_oihw, window_strides=(1, 1),
        padding=[(pad, pad), (pad, pad)],
        rhs_dilation=(dilation, dilation),
        dimension_numbers=("NCHW", "OIHW", "NCHW"))
    y = y + b[None, :, None, None]
    mean = y.mean(axis=(0, 2, 3), keepdims=True)
    var = ((y - mean) ** 2).mean(axis=(0, 2, 3), keepdims=True)
    y = (y - mean) / jnp.sqrt(var + 1e-5)
    y = y * g[None, :, None, None] + bt[None, :, None, None]
    return jnp.where(y >= 0.0, y, 0.1 * y)


def ref_block(x_nchw, params, w1_oihw, w2_oihw, *, dilation=1):
    y = _ref_stage(x_nchw, w1_oihw, params["b1"], params["g1"], params["bt1"],
                   dilation=dilation)
    y = _ref_stage(y, w2_oihw, params["b2"], params["g2"], params["bt2"],
                   dilation=dilation)
    return y


# ----------------------------------------------------------------------------
if __name__ == "__main__":
    # VGGBlock(in_channels=4, middle_channels=8, out_channels=16, dropout=0.0, dilation=1)
    N, Cin, H, W = 2, 4, 16, 16
    Cmid, Cout = 8, 16
    dilation = 1

    key = jax.random.PRNGKey(0)
    k = jax.random.split(key, 9)

    x = jax.random.normal(k[0], (N, Cin, H, W), dtype=jnp.float32)

    # Deterministic synthetic parameters (PyTorch conv weight layout OIHW).
    w1_oihw = 0.1 * jax.random.normal(k[1], (Cmid, Cin, 3, 3), dtype=jnp.float32)
    b1 = 0.05 * jax.random.normal(k[2], (Cmid,), dtype=jnp.float32)
    g1 = 1.0 + 0.1 * jax.random.normal(k[3], (Cmid,), dtype=jnp.float32)
    bt1 = 0.1 * jax.random.normal(k[4], (Cmid,), dtype=jnp.float32)

    w2_oihw = 0.1 * jax.random.normal(k[5], (Cout, Cmid, 3, 3), dtype=jnp.float32)
    b2 = 0.05 * jax.random.normal(k[6], (Cout,), dtype=jnp.float32)
    g2 = 1.0 + 0.1 * jax.random.normal(k[7], (Cout,), dtype=jnp.float32)
    bt2 = 0.1 * jax.random.normal(k[8], (Cout,), dtype=jnp.float32)

    params = {
        # kernel path uses HWIO layout: (3, 3, Cin, Cout)
        "w1": jnp.transpose(w1_oihw, (2, 3, 1, 0)),
        "b1": b1, "g1": g1, "bt1": bt1,
        "w2": jnp.transpose(w2_oihw, (2, 3, 1, 0)),
        "b2": b2, "g2": g2, "bt2": bt2,
    }

    out = jax.block_until_ready(vgg_block(x, params, dilation=dilation))
    ref = jax.block_until_ready(ref_block(x, params, w1_oihw, w2_oihw,
                                          dilation=dilation))

    assert out.shape == (N, Cout, H, W), out.shape
    # f32 MXU operands reproduce the reference to 1e-4; bf16 operands (default, per
    # the perf review) need a looser tolerance against the f32 reference.
    tol = 1e-4 if MXU_DTYPE == jnp.float32 else 5e-2
    np.testing.assert_allclose(np.asarray(out), np.asarray(ref), rtol=tol, atol=tol)

    print("KERNEL_OK")
</pallas_src>

<mosaic_0001>
module attributes {stable_mosaic.version = 11 : i64} {
  func.func @_vgg_block_kernel(%arg0: memref<8x512xf32, #tpu.memory_space<vmem>>, %arg1: memref<9x512xf32, #tpu.memory_space<vmem>>, %arg2: memref<8x72xbf16, #tpu.memory_space<vmem>>, %arg3: memref<8x1xf32, #tpu.memory_space<vmem>>, %arg4: memref<8x1xf32, #tpu.memory_space<vmem>>, %arg5: memref<16x72xbf16, #tpu.memory_space<vmem>>, %arg6: memref<16x1xf32, #tpu.memory_space<vmem>>, %arg7: memref<16x1xf32, #tpu.memory_space<vmem>>, %arg8: memref<16x512xf32, #tpu.memory_space<vmem>>, %arg9: memref<72x512xf32, #tpu.memory_space<vmem>>) attributes {dimension_semantics = [], scalar_prefetch = 0 : i64, scratch_operands = 1 : i64, tpu.core_type = #tpu.core_type<tc>} {
    %c0 = arith.constant 0 : index
    %c0_0 = arith.constant 0 : index
    %0 = vector.load %arg0[%c0, %c0_0] : memref<8x512xf32, #tpu.memory_space<vmem>>, vector<8x512xf32>
    %c17_i32 = arith.constant 17 : i32
    %1 = tpu.dynamic_rotate %0 by %c17_i32 dim 1 : vector<8x512xf32>, i32 -> vector<8x512xf32>
    %c0_1 = arith.constant 0 : index
    %c0_2 = arith.constant 0 : index
    %2 = vector.load %arg1[%c0_1, %c0_2] : memref<9x512xf32, #tpu.memory_space<vmem>>, vector<1x512xf32>
    %3 = vector.broadcast %2 : vector<1x512xf32> to vector<8x512xf32>
    %4 = arith.mulf %1, %3 : vector<8x512xf32>
    %c0_3 = arith.constant 0 : index
    %c0_4 = arith.constant 0 : index
    %5 = vector.load %arg9[%c0_3, %c0_4] : memref<72x512xf32, #tpu.memory_space<vmem>>, vector<8x512xf32>
    tpu.vector_store %arg9[%c0_3, %c0_4], %4 {strides = array<i32>} : memref<72x512xf32, #tpu.memory_space<vmem>>, vector<8x512xf32>,
    %c16_i32 = arith.constant 16 : i32
    %6 = tpu.dynamic_rotate %0 by %c16_i32 dim 1 : vector<8x512xf32>, i32 -> vector<8x512xf32>
    %c1 = arith.constant 1 : index
    %c0_5 = arith.constant 0 : index
    %7 = vector.load %arg1[%c1, %c0_5] : memref<9x512xf32, #tpu.memory_space<vmem>>, vector<1x512xf32>
    %8 = vector.broadcast %7 : vector<1x512xf32> to vector<8x512xf32>
    %9 = arith.mulf %6, %8 : vector<8x512xf32>
    %c8 = arith.constant 8 : index
    %c0_6 = arith.constant 0 : index
    %10 = vector.load %arg9[%c8, %c0_6] : memref<72x512xf32, #tpu.memory_space<vmem>>, vector<8x512xf32>
    tpu.vector_store %arg9[%c8, %c0_6], %9 {strides = array<i32>} : memref<72x512xf32, #tpu.memory_space<vmem>>, vector<8x512xf32>,
    %c15_i32 = arith.constant 15 : i32
    %11 = tpu.dynamic_rotate %0 by %c15_i32 dim 1 : vector<8x512xf32>, i32 -> vector<8x512xf32>
    %c2 = arith.constant 2 : index
    %c0_7 = arith.constant 0 : index
    %12 = vector.load %arg1[%c2, %c0_7] : memref<9x512xf32, #tpu.memory_space<vmem>>, vector<1x512xf32>
    %13 = vector.broadcast %12 : vector<1x512xf32> to vector<8x512xf32>
    %14 = arith.mulf %11, %13 : vector<8x512xf32>
    %c16 = arith.constant 16 : index
    %c0_8 = arith.constant 0 : index
    %15 = vector.load %arg9[%c16, %c0_8] : memref<72x512xf32, #tpu.memory_space<vmem>>, vector<8x512xf32>
    tpu.vector_store %arg9[%c16, %c0_8], %14 {strides = array<i32>} : memref<72x512xf32, #tpu.memory_space<vmem>>, vector<8x512xf32>,
    %c1_i32 = arith.constant 1 : i32
    %16 = tpu.dynamic_rotate %0 by %c1_i32 dim 1 : vector<8x512xf32>, i32 -> vector<8x512xf32>
    %c3 = arith.constant 3 : index
    %c0_9 = arith.constant 0 : index
    %17 = vector.load %arg1[%c3, %c0_9] : memref<9x512xf32, #tpu.memory_space<vmem>>, vector<1x512xf32>
    %18 = vector.broadcast %17 : vector<1x512xf32> to vector<8x512xf32>
    %19 = arith.mulf %16, %18 : vector<8x512xf32>
    %c24 = arith.constant 24 : index
    %c0_10 = arith.constant 0 : index
    %20 = vector.load %arg9[%c24, %c0_10] : memref<72x512xf32, #tpu.memory_space<vmem>>, vector<8x512xf32>
    tpu.vector_store %arg9[%c24, %c0_10], %19 {strides = array<i32>} : memref<72x512xf32, #tpu.memory_space<vmem>>, vector<8x512xf32>,
    %c32 = arith.constant 32 : index
    %c0_11 = arith.constant 0 : index
    %21 = vector.load %arg9[%c32, %c0_11] : memref<72x512xf32, #tpu.memory_space<vmem>>, vector<8x512xf32>
    tpu.vector_store %arg9[%c32, %c0_11], %0 {strides = array<i32>} : memref<72x512xf32, #tpu.memory_space<vmem>>, vector<8x512xf32>,
    %c511_i32 = arith.constant 511 : i32
    %22 = tpu.dynamic_rotate %0 by %c511_i32 dim 1 : vector<8x512xf32>, i32 -> vector<8x512xf32>
    %c5 = arith.constant 5 : index
    %c0_12 = arith.constant 0 : index
    %23 = vector.load %arg1[%c5, %c0_12] : memref<9x512xf32, #tpu.memory_space<vmem>>, vector<1x512xf32>
    %24 = vector.broadcast %23 : vector<1x512xf32> to vector<8x512xf32>
    %25 = arith.mulf %22, %24 : vector<8x512xf32>
    %c40 = arith.constant 40 : index
    %c0_13 = arith.constant 0 : index
    %26 = vector.load %arg9[%c40, %c0_13] : memref<72x512xf32, #tpu.memory_space<vmem>>, vector<8x512xf32>
    tpu.vector_store %arg9[%c40, %c0_13], %25 {strides = array<i32>} : memref<72x512xf32, #tpu.memory_space<vmem>>, vector<8x512xf32>,
    %c497_i32 = arith.constant 497 : i32
    %27 = tpu.dynamic_rotate %0 by %c497_i32 dim 1 : vector<8x512xf32>, i32 -> vector<8x512xf32>
    %c6 = arith.constant 6 : index
    %c0_14 = arith.constant 0 : index
    %28 = vector.load %arg1[%c6, %c0_14] : memref<9x512xf32, #tpu.memory_space<vmem>>, vector<1x512xf32>
    %29 = vector.broadcast %28 : vector<1x512xf32> to vector<8x512xf32>
    %30 = arith.mulf %27, %29 : vector<8x512xf32>
    %c48 = arith.constant 48 : index
    %c0_15 = arith.constant 0 : index
    %31 = vector.load %arg9[%c48, %c0_15] : memref<72x512xf32, #tpu.memory_space<vmem>>, vector<8x512xf32>
    tpu.vector_store %arg9[%c48, %c0_15], %30 {strides = array<i32>} : memref<72x512xf32, #tpu.memory_space<vmem>>, vector<8x512xf32>,
    %c496_i32 = arith.constant 496 : i32
    %32 = tpu.dynamic_rotate %0 by %c496_i32 dim 1 : vector<8x512xf32>, i32 -> vector<8x512xf32>
    %c7 = arith.constant 7 : index
    %c0_16 = arith.constant 0 : index
    %33 = vector.load %arg1[%c7, %c0_16] : memref<9x512xf32, #tpu.memory_space<vmem>>, vector<1x512xf32>
    %34 = vector.broadcast %33 : vector<1x512xf32> to vector<8x512xf32>
    %35 = arith.mulf %32, %34 : vector<8x512xf32>
    %c56 = arith.constant 56 : index
    %c0_17 = arith.constant 0 : index
    %36 = vector.load %arg9[%c56, %c0_17] : memref<72x512xf32, #tpu.memory_space<vmem>>, vector<8x512xf32>
    tpu.vector_store %arg9[%c56, %c0_17], %35 {strides = array<i32>} : memref<72x512xf32, #tpu.memory_space<vmem>>, vector<8x512xf32>,
    %c495_i32 = arith.constant 495 : i32
    %37 = tpu.dynamic_rotate %0 by %c495_i32 dim 1 : vector<8x512xf32>, i32 -> vector<8x512xf32>
    %c8_18 = arith.constant 8 : index
    %c0_19 = arith.constant 0 : index
    %38 = vector.load %arg1[%c8_18, %c0_19] : memref<9x512xf32, #tpu.memory_space<vmem>>, vector<1x512xf32>
    %39 = vector.broadcast %38 : vector<1x512xf32> to vector<8x512xf32>
    %40 = arith.mulf %37, %39 : vector<8x512xf32>
    %c64 = arith.constant 64 : index
    %c0_20 = arith.constant 0 : index
    %41 = vector.load %arg9[%c64, %c0_20] : memref<72x512xf32, #tpu.memory_space<vmem>>, vector<8x512xf32>
    tpu.vector_store %arg9[%c64, %c0_20], %40 {strides = array<i32>} : memref<72x512xf32, #tpu.memory_space<vmem>>, vector<8x512xf32>,
    %c0_21 = arith.constant 0 : index
    %c0_22 = arith.constant 0 : index
    %42 = vector.load %arg2[%c0_21, %c0_22] : memref<8x72xbf16, #tpu.memory_space<vmem>>, vector<8x72xbf16>
    %c0_23 = arith.constant 0 : index
    %c0_24 = arith.constant 0 : index
    %43 = vector.load %arg9[%c0_23, %c0_24] : memref<72x512xf32, #tpu.memory_space<vmem>>, vector<72x512xf32>
    %44 = arith.truncf %43 : vector<72x512xf32> to vector<72x512xbf16>
    %cst = arith.constant dense<0.000000e+00> : vector<8x512xf32>
    %45 = tpu.matmul %42, %44, %cst {dimension_numbers = #tpu.dot_dimension_numbers<[1], [0], [0], [1], [0, 0, 1, 1], [], []>} : vector<8x72xbf16>, vector<72x512xbf16>, vector<8x512xf32> -> vector<8x512xf32>
    %cst_25 = arith.constant dense<0.000000e+00> : vector<8xf32>
    %46 = vector.multi_reduction <add>, %45, %cst_25 [1] : vector<8x512xf32> to vector<8xf32>
    %47 = vector.shape_cast %46 : vector<8xf32> to vector<8x1xf32>
    %cst_26 = arith.constant 0.001953125 : f32
    %48 = vector.broadcast %cst_26 : f32 to vector<8x1xf32>
    %49 = arith.mulf %47, %48 : vector<8x1xf32>
    %50 = vector.broadcast %49 : vector<8x1xf32> to vector<8x512xf32>
    %51 = arith.subf %45, %50 : vector<8x512xf32>
    %52 = arith.mulf %51, %51 : vector<8x512xf32>
    %cst_27 = arith.constant dense<0.000000e+00> : vector<8xf32>
    %53 = vector.multi_reduction <add>, %52, %cst_27 [1] : vector<8x512xf32> to vector<8xf32>
    %54 = vector.shape_cast %53 : vector<8xf32> to vector<8x1xf32>
    %cst_28 = arith.constant 0.001953125 : f32
    %55 = vector.broadcast %cst_28 : f32 to vector<8x1xf32>
    %56 = arith.mulf %54, %55 : vector<8x1xf32>
    %c0_29 = arith.constant 0 : index
    %c0_30 = arith.constant 0 : index
    %57 = vector.load %arg3[%c0_29, %c0_30] : memref<8x1xf32, #tpu.memory_space<vmem>>, vector<8x1xf32>
    %cst_31 = arith.constant 9.99999974E-6 : f32
    %58 = vector.broadcast %cst_31 : f32 to vector<8x1xf32>
    %59 = arith.addf %56, %58 : vector<8x1xf32>
    %60 = math.rsqrt %59 : vector<8x1xf32>
    %61 = arith.mulf %57, %60 : vector<8x1xf32>
    %62 = vector.broadcast %61 : vector<8x1xf32> to vector<8x512xf32>
    %63 = arith.mulf %51, %62 : vector<8x512xf32>
    %c0_32 = arith.constant 0 : index
    %c0_33 = arith.constant 0 : index
    %64 = vector.load %arg4[%c0_32, %c0_33] : memref<8x1xf32, #tpu.memory_space<vmem>>, vector<8x1xf32>
    %65 = vector.broadcast %64 : vector<8x1xf32> to vector<8x512xf32>
    %66 = arith.addf %63, %65 : vector<8x512xf32>
    %cst_34 = arith.constant 0.000000e+00 : f32
    %67 = vector.broadcast %cst_34 : f32 to vector<8x512xf32>
    %68 = arith.cmpf oge, %66, %67 : vector<8x512xf32>
    %cst_35 = arith.constant 1.000000e-01 : f32
    %69 = vector.broadcast %cst_35 : f32 to vector<8x512xf32>
    %70 = arith.mulf %69, %66 : vector<8x512xf32>
    %71 = arith.select %68, %66, %70 : vector<8x512xi1>, vector<8x512xf32>
    %c17_i32_36 = arith.constant 17 : i32
    %72 = tpu.dynamic_rotate %71 by %c17_i32_36 dim 1 : vector<8x512xf32>, i32 -> vector<8x512xf32>
    %c0_37 = arith.constant 0 : index
    %c0_38 = arith.constant 0 : index
    %73 = vector.load %arg1[%c0_37, %c0_38] : memref<9x512xf32, #tpu.memory_space<vmem>>, vector<1x512xf32>
    %74 = vector.broadcast %73 : vector<1x512xf32> to vector<8x512xf32>
    %75 = arith.mulf %72, %74 : vector<8x512xf32>
    %c0_39 = arith.constant 0 : index
    %c0_40 = arith.constant 0 : index
    %76 = vector.load %arg9[%c0_39, %c0_40] : memref<72x512xf32, #tpu.memory_space<vmem>>, vector<8x512xf32>
    tpu.vector_store %arg9[%c0_39, %c0_40], %75 {strides = array<i32>} : memref<72x512xf32, #tpu.memory_space<vmem>>, vector<8x512xf32>,
    %c16_i32_41 = arith.constant 16 : i32
    %77 = tpu.dynamic_rotate %71 by %c16_i32_41 dim 1 : vector<8x512xf32>, i32 -> vector<8x512xf32>
    %c1_42 = arith.constant 1 : index
    %c0_43 = arith.constant 0 : index
    %78 = vector.load %arg1[%c1_42, %c0_43] : memref<9x512xf32, #tpu.memory_space<vmem>>, vector<1x512xf32>
    %79 = vector.broadcast %78 : vector<1x512xf32> to vector<8x512xf32>
    %80 = arith.mulf %77, %79 : vector<8x512xf32>
    %c8_44 = arith.constant 8 : index
    %c0_45 = arith.constant 0 : index
    %81 = vector.load %arg9[%c8_44, %c0_45] : memref<72x512xf32, #tpu.memory_space<vmem>>, vector<8x512xf32>
    tpu.vector_store %arg9[%c8_44, %c0_45], %80 {strides = array<i32>} : memref<72x512xf32, #tpu.memory_space<vmem>>, vector<8x512xf32>,
    %c15_i32_46 = arith.constant 15 : i32
    %82 = tpu.dynamic_rotate %71 by %c15_i32_46 dim 1 : vector<8x512xf32>, i32 -> vector<8x512xf32>
    %c2_47 = arith.constant 2 : index
    %c0_48 = arith.constant 0 : index
    %83 = vector.load %arg1[%c2_47, %c0_48] : memref<9x512xf32, #tpu.memory_space<vmem>>, vector<1x512xf32>
    %84 = vector.broadcast %83 : vector<1x512xf32> to vector<8x512xf32>
    %85 = arith.mulf %82, %84 : vector<8x512xf32>
    %c16_49 = arith.constant 16 : index
    %c0_50 = arith.constant 0 : index
    %86 = vector.load %arg9[%c16_49, %c0_50] : memref<72x512xf32, #tpu.memory_space<vmem>>, vector<8x512xf32>
    tpu.vector_store %arg9[%c16_49, %c0_50], %85 {strides = array<i32>} : memref<72x512xf32, #tpu.memory_space<vmem>>, vector<8x512xf32>,
    %c1_i32_51 = arith.constant 1 : i32
    %87 = tpu.dynamic_rotate %71 by %c1_i32_51 dim 1 : vector<8x512xf32>, i32 -> vector<8x512xf32>
    %c3_52 = arith.constant 3 : index
    %c0_53 = arith.constant 0 : index
    %88 = vector.load %arg1[%c3_52, %c0_53] : memref<9x512xf32, #tpu.memory_space<vmem>>, vector<1x512xf32>
    %89 = vector.broadcast %88 : vector<1x512xf32> to vector<8x512xf32>
    %90 = arith.mulf %87, %89 : vector<8x512xf32>
    %c24_54 = arith.constant 24 : index
    %c0_55 = arith.constant 0 : index
    %91 = vector.load %arg9[%c24_54, %c0_55] : memref<72x512xf32, #tpu.memory_space<vmem>>, vector<8x512xf32>
    tpu.vector_store %arg9[%c24_54, %c0_55], %90 {strides = array<i32>} : memref<72x512xf32, #tpu.memory_space<vmem>>, vector<8x512xf32>,
    %c32_56 = arith.constant 32 : index
    %c0_57 = arith.constant 0 : index
    %92 = vector.load %arg9[%c32_56, %c0_57] : memref<72x512xf32, #tpu.memory_space<vmem>>, vector<8x512xf32>
    tpu.vector_store %arg9[%c32_56, %c0_57], %71 {strides = array<i32>} : memref<72x512xf32, #tpu.memory_space<vmem>>, vector<8x512xf32>,
    %c511_i32_58 = arith.constant 511 : i32
    %93 = tpu.dynamic_rotate %71 by %c511_i32_58 dim 1 : vector<8x512xf32>, i32 -> vector<8x512xf32>
    %c5_59 = arith.constant 5 : index
    %c0_60 = arith.constant 0 : index
    %94 = vector.load %arg1[%c5_59, %c0_60] : memref<9x512xf32, #tpu.memory_space<vmem>>, vector<1x512xf32>
    %95 = vector.broadcast %94 : vector<1x512xf32> to vector<8x512xf32>
    %96 = arith.mulf %93, %95 : vector<8x512xf32>
    %c40_61 = arith.constant 40 : index
    %c0_62 = arith.constant 0 : index
    %97 = vector.load %arg9[%c40_61, %c0_62] : memref<72x512xf32, #tpu.memory_space<vmem>>, vector<8x512xf32>
    tpu.vector_store %arg9[%c40_61, %c0_62], %96 {strides = array<i32>} : memref<72x512xf32, #tpu.memory_space<vmem>>, vector<8x512xf32>,
    %c497_i32_63 = arith.constant 497 : i32
    %98 = tpu.dynamic_rotate %71 by %c497_i32_63 dim 1 : vector<8x512xf32>, i32 -> vector<8x512xf32>
    %c6_64 = arith.constant 6 : index
    %c0_65 = arith.constant 0 : index
    %99 = vector.load %arg1[%c6_64, %c0_65] : memref<9x512xf32, #tpu.memory_space<vmem>>, vector<1x512xf32>
    %100 = vector.broadcast %99 : vector<1x512xf32> to vector<8x512xf32>
    %101 = arith.mulf %98, %100 : vector<8x512xf32>
    %c48_66 = arith.constant 48 : index
    %c0_67 = arith.constant 0 : index
    %102 = vector.load %arg9[%c48_66, %c0_67] : memref<72x512xf32, #tpu.memory_space<vmem>>, vector<8x512xf32>
    tpu.vector_store %arg9[%c48_66, %c0_67], %101 {strides = array<i32>} : memref<72x512xf32, #tpu.memory_space<vmem>>, vector<8x512xf32>,
    %c496_i32_68 = arith.constant 496 : i32
    %103 = tpu.dynamic_rotate %71 by %c496_i32_68 dim 1 : vector<8x512xf32>, i32 -> vector<8x512xf32>
    %c7_69 = arith.constant 7 : index
    %c0_70 = arith.constant 0 : index
    %104 = vector.load %arg1[%c7_69, %c0_70] : memref<9x512xf32, #tpu.memory_space<vmem>>, vector<1x512xf32>
    %105 = vector.broadcast %104 : vector<1x512xf32> to vector<8x512xf32>
    %106 = arith.mulf %103, %105 : vector<8x512xf32>
    %c56_71 = arith.constant 56 : index
    %c0_72 = arith.constant 0 : index
    %107 = vector.load %arg9[%c56_71, %c0_72] : memref<72x512xf32, #tpu.memory_space<vmem>>, vector<8x512xf32>
    tpu.vector_store %arg9[%c56_71, %c0_72], %106 {strides = array<i32>} : memref<72x512xf32, #tpu.memory_space<vmem>>, vector<8x512xf32>,
    %c495_i32_73 = arith.constant 495 : i32
    %108 = tpu.dynamic_rotate %71 by %c495_i32_73 dim 1 : vector<8x512xf32>, i32 -> vector<8x512xf32>
    %c8_74 = arith.constant 8 : index
    %c0_75 = arith.constant 0 : index
    %109 = vector.load %arg1[%c8_74, %c0_75] : memref<9x512xf32, #tpu.memory_space<vmem>>, vector<1x512xf32>
    %110 = vector.broadcast %109 : vector<1x512xf32> to vector<8x512xf32>
    %111 = arith.mulf %108, %110 : vector<8x512xf32>
    %c64_76 = arith.constant 64 : index
    %c0_77 = arith.constant 0 : index
    %112 = vector.load %arg9[%c64_76, %c0_77] : memref<72x512xf32, #tpu.memory_space<vmem>>, vector<8x512xf32>
    tpu.vector_store %arg9[%c64_76, %c0_77], %111 {strides = array<i32>} : memref<72x512xf32, #tpu.memory_space<vmem>>, vector<8x512xf32>,
    %c0_78 = arith.constant 0 : index
    %c0_79 = arith.constant 0 : index
    %113 = vector.load %arg5[%c0_78, %c0_79] : memref<16x72xbf16, #tpu.memory_space<vmem>>, vector<16x72xbf16>
    %c0_80 = arith.constant 0 : index
    %c0_81 = arith.constant 0 : index
    %114 = vector.load %arg9[%c0_80, %c0_81] : memref<72x512xf32, #tpu.memory_space<vmem>>, vector<72x512xf32>
    %115 = arith.truncf %114 : vector<72x512xf32> to vector<72x512xbf16>
    %cst_82 = arith.constant dense<0.000000e+00> : vector<16x512xf32>
    %116 = tpu.matmul %113, %115, %cst_82 {dimension_numbers = #tpu.dot_dimension_numbers<[1], [0], [0], [1], [0, 0, 1, 1], [], []>} : vector<16x72xbf16>, vector<72x512xbf16>, vector<16x512xf32> -> vector<16x512xf32>
    %cst_83 = arith.constant dense<0.000000e+00> : vector<16xf32>
    %117 = vector.multi_reduction <add>, %116, %cst_83 [1] : vector<16x512xf32> to vector<16xf32>
    %118 = vector.shape_cast %117 : vector<16xf32> to vector<16x1xf32>
    %cst_84 = arith.constant 0.001953125 : f32
    %119 = vector.broadcast %cst_84 : f32 to vector<16x1xf32>
    %120 = arith.mulf %118, %119 : vector<16x1xf32>
    %121 = vector.broadcast %120 : vector<16x1xf32> to vector<16x512xf32>
    %122 = arith.subf %116, %121 : vector<16x512xf32>
    %123 = arith.mulf %122, %122 : vector<16x512xf32>
    %cst_85 = arith.constant dense<0.000000e+00> : vector<16xf32>
    %124 = vector.multi_reduction <add>, %123, %cst_85 [1] : vector<16x512xf32> to vector<16xf32>
    %125 = vector.shape_cast %124 : vector<16xf32> to vector<16x1xf32>
    %cst_86 = arith.constant 0.001953125 : f32
    %126 = vector.broadcast %cst_86 : f32 to vector<16x1xf32>
    %127 = arith.mulf %125, %126 : vector<16x1xf32>
    %c0_87 = arith.constant 0 : index
    %c0_88 = arith.constant 0 : index
    %128 = vector.load %arg6[%c0_87, %c0_88] : memref<16x1xf32, #tpu.memory_space<vmem>>, vector<16x1xf32>
    %cst_89 = arith.constant 9.99999974E-6 : f32
    %129 = vector.broadcast %cst_89 : f32 to vector<16x1xf32>
    %130 = arith.addf %127, %129 : vector<16x1xf32>
    %131 = math.rsqrt %130 : vector<16x1xf32>
    %132 = arith.mulf %128, %131 : vector<16x1xf32>
    %133 = vector.broadcast %132 : vector<16x1xf32> to vector<16x512xf32>
    %134 = arith.mulf %122, %133 : vector<16x512xf32>
    %c0_90 = arith.constant 0 : index
    %c0_91 = arith.constant 0 : index
    %135 = vector.load %arg7[%c0_90, %c0_91] : memref<16x1xf32, #tpu.memory_space<vmem>>, vector<16x1xf32>
    %136 = vector.broadcast %135 : vector<16x1xf32> to vector<16x512xf32>
    %137 = arith.addf %134, %136 : vector<16x512xf32>
    %cst_92 = arith.constant 0.000000e+00 : f32
    %138 = vector.broadcast %cst_92 : f32 to vector<16x512xf32>
    %139 = arith.cmpf oge, %137, %138 : vector<16x512xf32>
    %cst_93 = arith.constant 1.000000e-01 : f32
    %140 = vector.broadcast %cst_93 : f32 to vector<16x512xf32>
    %141 = arith.mulf %140, %137 : vector<16x512xf32>
    %142 = arith.select %139, %137, %141 : vector<16x512xi1>, vector<16x512xf32>
    %c0_94 = arith.constant 0 : index
    %c0_95 = arith.constant 0 : index
    %143 = vector.load %arg8[%c0_94, %c0_95] : memref<16x512xf32, #tpu.memory_space<vmem>>, vector<16x512xf32>
    tpu.vector_store %arg8[%c0_94, %c0_95], %142 {strides = array<i32>} : memref<16x512xf32, #tpu.memory_space<vmem>>, vector<16x512xf32>,
    return
  }
}

</mosaic_0001>

<bundles_post_ra>
// kernel: vgg_block.1
= control target key start
LH: loop header
LB: loop body
LE: loop exit
PB: predicated region body
PF: predicated region fallthrough
CT: control target
= control target key end

     0   :  { %s1269_s29 = smov 16   ;;  %s1270_s30 = smov 17   ;;  %v1276_v4 = vmov 0   ;;  %v42_v5 = vlaneseq  ;;  %vm452_vm8 = vcmask 1043456   ;;  %vm448_vm9 = vcmask 588800   ;;  %s1811_s0 = inlined_call_operand.vmem [shape: f32[8,512], index: 0, kind: input, shape index: {}]   ;;  %s1812_s1 = inlined_call_operand.vmem [shape: f32[9,512], index: 1, kind: input, shape index: {}]   ;;  %s1813_s2 = inlined_call_operand.vmem [shape: bf16[8,72], index: 2, kind: input, shape index: {}]   ;;  %s1814_s4 = inlined_call_operand.vmem [shape: f32[8,1], index: 4, kind: input, shape index: {}]   ;;  %s1815_s3 = inlined_call_operand.vmem [shape: f32[8,1], index: 3, kind: input, shape index: {}]   ;;  %s1816_s5 = inlined_call_operand.vmem [shape: bf16[16,72], index: 5, kind: input, shape index: {}]   ;;  %s1817_s6 = inlined_call_operand.vmem [shape: f32[16,1], index: 6, kind: input, shape index: {}]   ;;  %s1818_s7 = inlined_call_operand.vmem [shape: f32[16,1], index: 7, kind: input, shape index: {}]   ;;  %s1819_s8 = inlined_call_operand.vmem [shape: f32[16,512], index: 8, kind: output, shape index: {}]  }
   0x1   :  { %v1326_v0 = vld [vmem:[%s1811_s0] sm:$0xff]  ;;  %v1335_v1 = vld [vmem:[%s1811_s0 + $0x8] sm:$0xff]  ;;  %v1344_v2 = vld [vmem:[%s1811_s0 + $0x18] sm:$0xff]  ;;  %s1271_s15 = smov 15   ;;  %s1272_s16 = smov 1   ;;  %497 = vmatprep.mubr.bf16.mxu0 %v1276_v4  ;;  %538 = vmatprep.mubr.bf16.mxu1 %v1276_v4 }
   0x2   :  { %79 = vrot.lane.b32.xlu1 %v1326_v0, %s1269_s29  ;;  %34 = vrot.lane.b32.xlu0 %v1326_v0, %s1270_s30  ;;  %v1353_v3 = vld [vmem:[%s1811_s0 + $0x10] sm:$0xff]  ;;  %s1273_s0 = smov 127   ;;  %s1274_s17 = smov 113   ;;  %v52_v6 = vshrl.u32 %v42_v5, 7  ;;  %v1411_v7 = vand.u32 127, %v42_v5 }
   0x3   :  { %s1275_s18 = smov 112   ;;  %1260 = vset.pattern.permute.xlu0 %v1276_v4  ;;  %1261 = vset.pattern.permute.xlu1 %v1276_v4  ;;  %s1277_s19 = smov 111   ;;  %v1228_v9 = vld [vmem:[%s1812_s1 + $0x1] ss:$8 sm:$0xf] }
   0x4   :  { %v1413_v8 = vsub.s32 1, %v52_v6  ;;  %v49_v10 = vld [vmem:[%s1812_s1] ss:$8 sm:$0xf]  ;;  %v1421_v13 = vsub.s32 0, %v52_v6  ;;  %vm87_vm0 = vcmp.lt.s32.totalorder %v1411_v7, 16 }
   0x5   :  { %vm44_vm1 = vcmp.lt.s32.totalorder %v1411_v7, 17  ;;  %v1427_v18 = vsub.s32 2, %v52_v6  ;;  %v1429_v19 = vsub.s32 3, %v52_v6  ;;  %v1229_v48 = vld [vmem:[%s1812_s1 + $0x2] ss:$8 sm:$0xf] }
   0x6   :  { %81 = vrot.lane.b32.xlu1 %v1335_v1, %s1269_s29  ;;  %36 = vrot.lane.b32.xlu0 %v1335_v1, %s1270_s30  ;;  %v58_v14 = vrot.slane %v49_v10, %v1413_v8  ;;  %v102_v15 = vrot.slane %v1228_v9, %v1413_v8  ;;  %v98_v22 = vrot.slane %v1228_v9, %v1421_v13  ;;  %v1230_v49 = vld [vmem:[%s1812_s1 + $0x3] ss:$8 sm:$0xf]  ;;  %vm131_vm2 = vcmp.lt.s32.totalorder %v1411_v7, 15 }
   0x7   :  { %v54_v23 = vrot.slane %v49_v10, %v1421_v13  ;;  %v106_v31 = vrot.slane %v1228_v9, %v1427_v18  ;;  %v62_v32 = vrot.slane %v49_v10, %v1427_v18  ;;  %v66_v35 = vrot.slane %v49_v10, %v1429_v19 }
   0x8   :  { %v110_v36 = vrot.slane %v1228_v9, %v1429_v19  ;;  %v146_v54 = vrot.slane %v1229_v48, %v1413_v8  ;;  %vm175_vm3 = vcmp.lt.s32.totalorder %v1411_v7, 1  ;;  %v190_v55 = vrot.slane %v1230_v49, %v1413_v8 }
   0x9   :  { %v186_v62 = vrot.slane %v1230_v49, %v1421_v13  ;;  %v142_v63 = vrot.slane %v1229_v48, %v1421_v13  ;;  %vm223_vm4 = vcmp.lt.s32.totalorder %v1411_v7, 127  ;;  %vm267_vm5 = vcmp.lt.s32.totalorder %v1411_v7, 113 }
   0xa   :  { %85 = vrot.lane.b32.xlu1 %v1344_v2, %s1269_s29  ;;  %40 = vrot.lane.b32.xlu0 %v1344_v2, %s1270_s30  ;;  %vm311_vm6 = vcmp.lt.s32.totalorder %v1411_v7, 112  ;;  %vm355_vm7 = vcmp.lt.s32.totalorder %v1411_v7, 111 }
   0xe   :  { %83 = vrot.lane.b32.xlu1 %v1353_v3, %s1269_s29  ;;  %38 = vrot.lane.b32.xlu0 %v1353_v3, %s1270_s30 }
  0x12   :  { %125 = vrot.lane.b32.xlu1 %v1335_v1, %s1271_s15  ;;  %123 = vrot.lane.b32.xlu0 %v1326_v0, %s1271_s15 }
  0x16   :  { %169 = vrot.lane.b32.xlu1 %v1335_v1, %s1272_s16  ;;  %167 = vrot.lane.b32.xlu0 %v1326_v0, %s1272_s16 }
  0x1a   :  { %173 = vrot.lane.b32.xlu1 %v1344_v2, %s1272_s16  ;;  %129 = vrot.lane.b32.xlu0 %v1344_v2, %s1271_s15 }
  0x1e   :  { %171 = vrot.lane.b32.xlu1 %v1353_v3, %s1272_s16  ;;  %127 = vrot.lane.b32.xlu0 %v1353_v3, %s1271_s15 }
  0x22   :  { %219 = vrot.lane.b32.xlu1 %v1353_v3, %s1273_s0  ;;  %217 = vrot.lane.b32.xlu0 %v1335_v1, %s1273_s0 }
  0x26   :  { %221 = vrot.lane.b32.xlu1 %v1344_v2, %s1273_s0  ;;  %215 = vrot.lane.b32.xlu0 %v1326_v0, %s1273_s0 }
  0x2a   :  { %263 = vrot.lane.b32.xlu1 %v1353_v3, %s1274_s17  ;;  %261 = vrot.lane.b32.xlu0 %v1335_v1, %s1274_s17 }
  0x2e   :  { %307 = vrot.lane.b32.xlu1 %v1353_v3, %s1275_s18  ;;  %305 = vrot.lane.b32.xlu0 %v1335_v1, %s1275_s18 }
  0x32   :  { %303 = vrot.lane.b32.xlu1 %v1326_v0, %s1275_s18  ;;  %259 = vrot.lane.b32.xlu0 %v1326_v0, %s1274_s17 }
  0x36   :  { %309 = vrot.lane.b32.xlu1 %v1344_v2, %s1275_s18  ;;  %265 = vrot.lane.b32.xlu0 %v1344_v2, %s1274_s17 }
  0x3a   :  { %349 = vrot.lane.b32.xlu1 %v1335_v1, %s1277_s19  ;;  %347 = vrot.lane.b32.xlu0 %v1326_v0, %s1277_s19 }
  0x3e   :  { %353 = vrot.lane.b32.xlu1 %v1344_v2, %s1277_s19  ;;  %351 = vrot.lane.b32.xlu0 %v1353_v3, %s1277_s19 }
  0x74   :  { %v80_v11 = vpop.permute.xlu1 %79  ;;  %v35_v12 = vpop.permute.xlu0 %34 }
  0x78   :  { %v82_v16 = vpop.permute.xlu1 %81  ;;  %v37_v17 = vpop.permute.xlu0 %36 }
  0x79   :  { %v90_v20 = vsel %vm87_vm0, %v80_v11, %v82_v16  ;;  %v47_v21 = vsel %vm44_vm1, %v35_v12, %v37_v17 }
  0x7a   :  { %v72_v24 = vmul.f32 %v58_v14, %v47_v21  ;;  %v116_v25 = vmul.f32 %v102_v15, %v90_v20  ;;  %v198_v14 = vrot.slane %v1230_v49, %v1429_v19  ;;  %v1231_v15 = vld [vmem:[%s1812_s1 + $0x5] ss:$8 sm:$0xf]  ;;  %v150_v20 = vrot.slane %v1229_v48, %v1427_v18 }
  0x7b   :  { %v154_v21 = vrot.slane %v1229_v48, %v1429_v19 }
  0x7c   :  { %v86_v26 = vpop.permute.xlu1 %85  ;;  %v41_v27 = vpop.permute.xlu0 %40  ;;  %v429_v28 = vpack.c.bf16 %v116_v25, %v72_v24  ;;  %v238_v25 = vrot.slane %v1231_v15, %v1413_v8 }
  0x7d   :  { %v91_v29 = vsel %vm87_vm0, %v86_v26, %v80_v11  ;;  %v48_v30 = vsel %vm44_vm1, %v41_v27, %v35_v12  ;;  %v194_v12 = vrot.slane %v1230_v49, %v1427_v18 }
  0x7e   :  { %v115_v33 = vmul.f32 %v98_v22, %v91_v29  ;;  %v71_v34 = vmul.f32 %v54_v23, %v48_v30  ;;  %465 = vmatprep.subr.bf16.mxu0 %v429_v28 }
  0x80   :  { %v84_v37 = vpop.permute.xlu1 %83  ;;  %v39_v38 = vpop.permute.xlu0 %38  ;;  %v428_v39 = vpack.c.bf16 %v115_v33, %v71_v34 }
  0x81   :  { %v88_v40 = vsel %vm87_vm0, %v84_v37, %v86_v26  ;;  %v89_v41 = vsel %vm87_vm0, %v82_v16, %v84_v37  ;;  %v45_v42 = vsel %vm44_vm1, %v39_v38, %v41_v27  ;;  %v46_v43 = vsel %vm44_vm1, %v37_v17, %v39_v38 }
  0x82   :  { %v117_v44 = vmul.f32 %v106_v31, %v89_v41  ;;  %v73_v45 = vmul.f32 %v62_v32, %v46_v43  ;;  %466 = vmatpush1.bf16.msra.mxu0 %v428_v39  ;;  %v74_v46 = vmul.f32 %v66_v35, %v45_v42  ;;  %v118_v47 = vmul.f32 %v110_v36, %v88_v40 }
  0x83   :  { %v242_v40 = vrot.slane %v1231_v15, %v1427_v18  ;;  %v234_v41 = vrot.slane %v1231_v15, %v1421_v13  ;;  %v246_v42 = vrot.slane %v1231_v15, %v1429_v19 }
  0x84   :  { %v126_v50 = vpop.permute.xlu1 %125  ;;  %v124_v51 = vpop.permute.xlu0 %123  ;;  %v431_v52 = vpack.c.bf16 %v118_v47, %v74_v46  ;;  %v430_v53 = vpack.c.bf16 %v117_v44, %v73_v45 }
  0x85   :  { %v134_v56 = vsel %vm131_vm2, %v124_v51, %v126_v50 }
  0x86   :  { %506 = vmatprep.subr.bf16.mxu1 %v431_v52  ;;  %v160_v60 = vmul.f32 %v146_v54, %v134_v56  ;;  %v1232_v52 = vld [vmem:[%s1812_s1 + $0x6] ss:$8 sm:$0xf] }
  0x87   :  { %507 = vmatpush1.bf16.msra.mxu1 %v430_v53 }
  0x88   :  { %v170_v57 = vpop.permute.xlu1 %169  ;;  %v168_v58 = vpop.permute.xlu0 %167 }
  0x89   :  { %v178_v59 = vsel %vm175_vm3, %v168_v58, %v170_v57 }
  0x8a   :  { %v204_v61 = vmul.f32 %v190_v55, %v178_v59 }
  0x8c   :  { %v174_v5 = vpop.permute.xlu1 %173  ;;  %v130_v6 = vpop.permute.xlu0 %129  ;;  %v433_v9 = vpack.c.bf16 %v204_v61, %v160_v60 }
  0x8d   :  { %v179_v10 = vsel %vm175_vm3, %v174_v5, %v168_v58  ;;  %v135_v11 = vsel %vm131_vm2, %v130_v6, %v124_v51  ;;  %v282_v58 = vrot.slane %v1232_v52, %v1413_v8 }
  0x8e   :  { %v203_v16 = vmul.f32 %v186_v62, %v179_v10  ;;  %v159_v17 = vmul.f32 %v142_v63, %v135_v11  ;;  %467 = vmatprep.subr.bf16.mxu0 %v433_v9 }
  0x90   :  { %v172_v22 = vpop.permute.xlu1 %171  ;;  %v128_v23 = vpop.permute.xlu0 %127  ;;  %v432_v24 = vpack.c.bf16 %v203_v16, %v159_v17  ;;  %v1234_v16 = vld [vmem:[%s1812_s1 + $0x20] ss:$8 sm:$0xf] }
  0x91   :  { %v176_v26 = vsel %vm175_vm3, %v172_v22, %v174_v5  ;;  %v177_v27 = vsel %vm175_vm3, %v170_v57, %v172_v22  ;;  %v132_v28 = vsel %vm131_vm2, %v128_v23, %v130_v6  ;;  %v133_v29 = vsel %vm131_vm2, %v126_v50, %v128_v23 }
  0x92   :  { %v205_v30 = vmul.f32 %v194_v12, %v177_v27  ;;  %v206_v31 = vmul.f32 %v198_v14, %v176_v26  ;;  %v161_v32 = vmul.f32 %v150_v20, %v133_v29  ;;  %v162_v33 = vmul.f32 %v154_v21, %v132_v28  ;;  %468 = vmatpush1.bf16.msra.mxu0 %v432_v24 }
  0x93   :  { %v278_v5 = vrot.slane %v1232_v52, %v1421_v13  ;;  %v286_v21 = vrot.slane %v1232_v52, %v1427_v18  ;;  %v290_v22 = vrot.slane %v1232_v52, %v1429_v19  ;;  %v366_v26 = vrot.slane %v1234_v16, %v1421_v13 }
  0x94   :  { %v220_v34 = vpop.permute.xlu1 %219  ;;  %v218_v35 = vpop.permute.xlu0 %217  ;;  %v435_v36 = vpack.c.bf16 %v206_v31, %v162_v33  ;;  %v434_v37 = vpack.c.bf16 %v205_v30, %v161_v32 }
  0x95   :  { %v225_v38 = vsel %vm223_vm4, %v218_v35, %v220_v34 }
  0x96   :  { %v252_v39 = vmul.f32 %v238_v25, %v225_v38  ;;  %508 = vmatprep.subr.bf16.mxu1 %v435_v36 }
  0x97   :  { %509 = vmatpush1.bf16.msra.mxu1 %v434_v37 }
  0x98   :  { %v222_v43 = vpop.permute.xlu1 %221  ;;  %v216_v44 = vpop.permute.xlu0 %215  ;;  %v437_v45 = vpack.c.bf16 %v252_v39, %v1335_v1  ;;  %v1233_v1 = vld [vmem:[%s1812_s1 + $0x7] ss:$8 sm:$0xf] }
  0x99   :  { %v224_v46 = vsel %vm223_vm4, %v220_v34, %v222_v43  ;;  %v226_v47 = vsel %vm223_vm4, %v216_v44, %v218_v35  ;;  %v227_v48 = vsel %vm223_vm4, %v222_v43, %v216_v44  ;;  %v326_v59 = vrot.slane %v1233_v1, %v1413_v8 }
  0x9a   :  { %v253_v49 = vmul.f32 %v242_v40, %v224_v46  ;;  %v251_v50 = vmul.f32 %v234_v41, %v226_v47  ;;  %v254_v51 = vmul.f32 %v246_v42, %v227_v48  ;;  %469 = vmatprep.subr.bf16.mxu0 %v437_v45  ;;  %v330_v14 = vrot.slane %v1233_v1, %v1427_v18 }
  0x9b   :  { %v334_v15 = vrot.slane %v1233_v1, %v1429_v19  ;;  %v378_v41 = vrot.slane %v1234_v16, %v1429_v19  ;;  %v370_v42 = vrot.slane %v1234_v16, %v1413_v8  ;;  %v374_v43 = vrot.slane %v1234_v16, %v1427_v18 }
  0x9c   :  { %v264_v53 = vpop.permute.xlu1 %263  ;;  %v262_v54 = vpop.permute.xlu0 %261  ;;  %v436_v55 = vpack.c.bf16 %v251_v50, %v1326_v0  ;;  %v439_v56 = vpack.c.bf16 %v254_v51, %v1344_v2  ;;  %v438_v57 = vpack.c.bf16 %v253_v49, %v1353_v3  ;;  %v322_v3 = vrot.slane %v1233_v1, %v1421_v13 }
  0x9d   :  { %v269_v60 = vsel %vm267_vm5, %v262_v54, %v264_v53 }
  0x9e   :  { %470 = vmatpush1.bf16.msra.mxu0 %v436_v55  ;;  %510 = vmatprep.subr.bf16.mxu1 %v439_v56  ;;  %v296_v2 = vmul.f32 %v282_v58, %v269_v60 }
  0x9f   :  { %511 = vmatpush1.bf16.msra.mxu1 %v438_v57  ;;  %v391_v57 = vld [vmem:[%s1813_s2] sm:$0xf] }
  0xa0   :  { %v308_v61 = vpop.permute.xlu1 %307  ;;  %v306_v62 = vpop.permute.xlu0 %305 }
  0xa1   :  { %v313_v0 = vsel %vm311_vm6, %v306_v62, %v308_v61 }
  0xa2   :  { %v340_v63 = vmul.f32 %v326_v59, %v313_v0 }
  0xa4   :  { %v304_v6 = vpop.permute.xlu1 %303  ;;  %v260_v9 = vpop.permute.xlu0 %259  ;;  %v441_v10 = vpack.c.bf16 %v340_v63, %v296_v2 }
  0xa5   :  { %v314_v11 = vsel %vm311_vm6, %v304_v6, %v306_v62  ;;  %v270_v12 = vsel %vm267_vm5, %v260_v9, %v262_v54 }
  0xa6   :  { %v339_v17 = vmul.f32 %v322_v3, %v314_v11  ;;  %v295_v20 = vmul.f32 %v278_v5, %v270_v12  ;;  %471 = vmatprep.subr.bf16.mxu0 %v441_v10 }
  0xa8   :  { %v310_v23 = vpop.permute.xlu1 %309  ;;  %v266_v24 = vpop.permute.xlu0 %265  ;;  %v440_v25 = vpack.c.bf16 %v339_v17, %v295_v20 }
  0xa9   :  { %v312_v27 = vsel %vm311_vm6, %v308_v61, %v310_v23  ;;  %v315_v28 = vsel %vm311_vm6, %v310_v23, %v304_v6  ;;  %v268_v29 = vsel %vm267_vm5, %v264_v53, %v266_v24  ;;  %v271_v30 = vsel %vm267_vm5, %v266_v24, %v260_v9  ;;  %v580_v24 = vld [vmem:[%s1814_s4] sm:$0xff] }
  0xaa   :  { %v341_v31 = vmul.f32 %v330_v14, %v312_v27  ;;  %v342_v32 = vmul.f32 %v334_v15, %v315_v28  ;;  %v297_v33 = vmul.f32 %v286_v21, %v268_v29  ;;  %v298_v34 = vmul.f32 %v290_v22, %v271_v30  ;;  %472 = vmatpush1.bf16.msra.mxu0 %v440_v25  ;;  %v567_v28 = vld [vmem:[%s1815_s3] sm:$0xff] }
  0xac   :  { %v350_v35 = vpop.permute.xlu1 %349  ;;  %v348_v36 = vpop.permute.xlu0 %347  ;;  %v443_v37 = vpack.c.bf16 %v342_v32, %v298_v34  ;;  %v442_v38 = vpack.c.bf16 %v341_v31, %v297_v33 }
  0xad   :  { %v358_v39 = vsel %vm355_vm7, %v348_v36, %v350_v35 }
  0xae   :  { %v383_v40 = vmul.f32 %v366_v26, %v358_v39  ;;  %512 = vmatprep.subr.bf16.mxu1 %v443_v37 }
  0xaf   :  { %513 = vmatpush1.bf16.msra.mxu1 %v442_v38 }
  0xb0   :  { %v354_v44 = vpop.permute.xlu1 %353  ;;  %v352_v45 = vpop.permute.xlu0 %351  ;;  %v444_v49 = vpack.c.bf16 %v383_v40, %v383_v40 }
  0xb1   :  { %v359_v46 = vsel %vm355_vm7, %v354_v44, %v348_v36  ;;  %v356_v47 = vsel %vm355_vm7, %v352_v45, %v354_v44  ;;  %v357_v48 = vsel %vm355_vm7, %v350_v35, %v352_v45 }
  0xb2   :  { %v386_v50 = vmul.f32 %v378_v41, %v359_v46  ;;  %v384_v51 = vmul.f32 %v370_v42, %v357_v48  ;;  %v385_v52 = vmul.f32 %v374_v43, %v356_v47  ;;  %v454_v55 = vsel %vm452_vm8, %v444_v49, 0 }
  0xb4   :  { %v447_v1 = vpack.c.bf16 %v386_v50, %v386_v50  ;;  %v445_v53 = vpack.c.bf16 %v384_v51, %v384_v51  ;;  %v446_v54 = vpack.c.bf16 %v385_v52, %v385_v52 }
  0xb6   :  { %1235 = vmatprep.subr.msk.bf16.mxu0 %vm452_vm8, %v445_v53  ;;  %1237 = vmatprep.subr.msk.bf16.mxu1 %vm452_vm8, %v447_v1  ;;  %v460_v56 = vsel %vm452_vm8, %v446_v54, 0  ;;  %v614_v1 = vld [vmem:[%s1812_s1] ss:$8 sm:$0xf] }
  0xb7   :  { %474 = vmatpush1.bf16.msra.mxu0 %v454_v55  ;;  %515 = vmatpush1.bf16.msra.mxu1 %v460_v56  ;;  %v1239_v53 = vld [vmem:[%s1812_s1 + $0x1] ss:$8 sm:$0xf]  ;;  %v623_v56 = vrot.slane %v614_v1, %v1413_v8 }
  0xba   :  { %1236 = vmatmul.mubr.msk.bf16.vlgmr.msra.gmra.mrb[0].mxu0 %vm448_vm9, %v391_v57  ;;  %1238 = vmatmul.mubr.msk.bf16.vlgmr.msra.gmra.mrb[0].mxu1 %vm448_vm9, %v391_v57  ;;  %v665_v57 = vrot.slane %v1239_v53, %v1413_v8 }
  0xbb   :  { %1052 = vmatprep.mubr.bf16.mxu0 %v1276_v4  ;;  %1095 = vmatprep.mubr.bf16.mxu1 %v1276_v4 }
 0x18d   :  { %v499_v58 = vpop.f32.mrb[0].mxu0  ;;  %v540_v59 = vpop.f32.mrb[0].mxu1 }
 0x18e   :  { %v501_v60 = vpop.f32.mrb[1].mxu0  ;;  %v542_v61 = vpop.f32.mrb[1].mxu1 }
 0x18f   :  { %v547_v62 = vadd.f32 %v501_v60, %v499_v58  ;;  %v503_v0 = vpop.f32.mrb[2].mxu0  ;;  %v544_v2 = vpop.f32.mrb[2].mxu1 }
 0x190   :  { %v504_v63 = vpop.f32.mrb[3].mxu0  ;;  %v545_v3 = vpop.f32.mrb[3].mxu1 }
 0x191   :  { %v548_v5 = vadd.f32 %v547_v62, %v540_v59  ;;  %v619_v3 = vrot.slane %v614_v1, %v1421_v13 }
 0x193   :  { %v549_v6 = vadd.f32 %v548_v5, %v542_v61  ;;  %v661_v5 = vrot.slane %v1239_v53, %v1421_v13 }
 0x195   :  { %550 = vadd.xlane.f32.xlu0 %v549_v6 }
 0x222   :  { %v551_v9 = vpop.xlane.xlu0 %550 }
 0x223   :  { %v552_v10 = vmul.f32 0.001953125, %v551_v9 }
 0x225   :  { %v553_v11 = vsub.f32 %v499_v58, %v552_v10  ;;  %v554_v12 = vsub.f32 %v501_v60, %v552_v10  ;;  %v555_v14 = vsub.f32 %v540_v59, %v552_v10  ;;  %v556_v15 = vsub.f32 %v542_v61, %v552_v10 }
 0x227   :  { %v557_v16 = vmul.f32 %v553_v11, %v553_v11  ;;  %v558_v4 = vmul.f32 %v554_v12, %v554_v12  ;;  %v559_v17 = vmul.f32 %v555_v14, %v555_v14  ;;  %v560_v21 = vmul.f32 %v556_v15, %v556_v15 }
 0x229   :  { %v561_v20 = vadd.f32 %v558_v4, %v557_v16  ;;  %v669_v4 = vrot.slane %v1239_v53, %v1427_v18 }
 0x22b   :  { %v562_v22 = vadd.f32 %v561_v20, %v559_v17  ;;  %v673_v17 = vrot.slane %v1239_v53, %v1429_v19 }
 0x22d   :  { %v563_v23 = vadd.f32 %v562_v22, %v560_v21 }
 0x22f   :  { %564 = vadd.xlane.f32.xlu1 %v563_v23 }
 0x240   :  { %583 = vperm.xlu1 %1261, %v580_v24  }
 0x2bc   :  { %v565_v25 = vpop.xlane.xlu1 %564 }
 0x2bd   :  { %v566_v26 = vmul.f32 0.001953125, %v565_v25 }
 0x2bf   :  { %v568_v27 = vadd.f32 1e-05, %v566_v26 }
 0x2c0   :  { %v584_v32 = vpop.permute.xlu1 %583 }
 0x2c1   :  { %1263 = vrsqrt.f32 %v568_v27 }
 0x2cb   :  { %v1264_v29 = vpop.eup %1263 }
 0x2cc   :  { %v570_v30 = vmul.f32 %v1264_v29, %v567_v28 }
 0x2ce   :  { %573 = vperm.xlu0 %1260, %v570_v30  }
 0x34d   :  { %v574_v31 = vpop.permute.xlu0 %573 }
 0x34e   :  { %v576_v33 = vmul.f32 %v574_v31, %v553_v11  ;;  %v577_v34 = vmul.f32 %v574_v31, %v554_v12  ;;  %v578_v35 = vmul.f32 %v574_v31, %v555_v14  ;;  %v579_v41 = vmul.f32 %v574_v31, %v556_v15  ;;  %v1241_v31 = vld [vmem:[%s1812_s1 + $0x3] ss:$8 sm:$0xf] }
 0x34f   :  { %v627_v11 = vrot.slane %v614_v1, %v1427_v18  ;;  %v631_v12 = vrot.slane %v614_v1, %v1429_v19 }
 0x350   :  { %v586_v36 = vadd.f32 %v584_v32, %v576_v33  ;;  %v588_v37 = vadd.f32 %v584_v32, %v578_v35  ;;  %v587_v38 = vadd.f32 %v584_v32, %v577_v34  ;;  %v589_v45 = vadd.f32 %v584_v32, %v579_v41  ;;  %v1240_v35 = vld [vmem:[%s1812_s1 + $0x2] ss:$8 sm:$0xf] }
 0x351   :  { %v715_v53 = vrot.slane %v1240_v35, %v1429_v19 }
 0x352   :  { %vm590_vm10 = vcmp.ge.f32.partialorder %v586_v36, 0.0  ;;  %vm592_vm11 = vcmp.ge.f32.partialorder %v588_v37, 0.0  ;;  %v594_v39 = vmul.f32 0.1, %v586_v36  ;;  %v596_v40 = vmul.f32 0.1, %v588_v37 }
 0x353   :  { %v595_v42 = vmul.f32 0.1, %v587_v38  ;;  %vm591_vm12 = vcmp.ge.f32.partialorder %v587_v38, 0.0  ;;  %v597_v47 = vmul.f32 0.1, %v589_v45  ;;  %vm593_vm13 = vcmp.ge.f32.partialorder %v589_v45, 0.0 }
 0x354   :  { %v1570_v43 = vsel %vm590_vm10, %v586_v36, %v594_v39  ;;  %v1572_v44 = vsel %vm592_vm11, %v588_v37, %v596_v40  ;;  %v707_v36 = vrot.slane %v1240_v35, %v1413_v8  ;;  %v749_v37 = vrot.slane %v1241_v31, %v1413_v8 }
 0x355   :  { %606 = vrot.lane.b32.xlu0 %v1572_v44, %s1270_s30  ;;  %602 = vrot.lane.b32.xlu1 %v1570_v43, %s1270_s30  ;;  %v1578_v46 = vsel %vm591_vm12, %v587_v38, %v595_v42  ;;  %v1588_v48 = vsel %vm593_vm13, %v589_v45, %v597_v47  ;;  %v703_v42 = vrot.slane %v1240_v35, %v1421_v13 }
 0x359   :  { %686 = vrot.lane.b32.xlu0 %v1570_v43, %s1271_s15  ;;  %604 = vrot.lane.b32.xlu1 %v1578_v46, %s1270_s30 }
 0x35d   :  { %728 = vrot.lane.b32.xlu0 %v1570_v43, %s1272_s16  ;;  %644 = vrot.lane.b32.xlu1 %v1570_v43, %s1269_s29 }
 0x361   :  { %692 = vrot.lane.b32.xlu0 %v1588_v48, %s1271_s15  ;;  %646 = vrot.lane.b32.xlu1 %v1578_v46, %s1269_s29 }
 0x365   :  { %690 = vrot.lane.b32.xlu0 %v1572_v44, %s1271_s15  ;;  %608 = vrot.lane.b32.xlu1 %v1588_v48, %s1270_s30 }
 0x369   :  { %776 = vrot.lane.b32.xlu0 %v1578_v46, %s1273_s0  ;;  %650 = vrot.lane.b32.xlu1 %v1588_v48, %s1269_s29 }
 0x36d   :  { %774 = vrot.lane.b32.xlu0 %v1570_v43, %s1273_s0  ;;  %648 = vrot.lane.b32.xlu1 %v1572_v44, %s1269_s29 }
 0x371   :  { %818 = vrot.lane.b32.xlu0 %v1578_v46, %s1274_s17  ;;  %688 = vrot.lane.b32.xlu1 %v1578_v46, %s1271_s15 }
 0x375   :  { %860 = vrot.lane.b32.xlu0 %v1578_v46, %s1275_s18  ;;  %730 = vrot.lane.b32.xlu1 %v1578_v46, %s1272_s16 }
 0x379   :  { %816 = vrot.lane.b32.xlu0 %v1570_v43, %s1274_s17  ;;  %734 = vrot.lane.b32.xlu1 %v1588_v48, %s1272_s16 }
 0x37d   :  { %822 = vrot.lane.b32.xlu0 %v1588_v48, %s1274_s17  ;;  %732 = vrot.lane.b32.xlu1 %v1572_v44, %s1272_s16 }
 0x381   :  { %900 = vrot.lane.b32.xlu0 %v1570_v43, %s1277_s19  ;;  %778 = vrot.lane.b32.xlu1 %v1572_v44, %s1273_s0 }
 0x385   :  { %904 = vrot.lane.b32.xlu0 %v1572_v44, %s1277_s19  ;;  %780 = vrot.lane.b32.xlu1 %v1588_v48, %s1273_s0 }
 0x389   :  { %820 = vrot.lane.b32.xlu1 %v1572_v44, %s1274_s17 }
 0x38d   :  { %862 = vrot.lane.b32.xlu1 %v1572_v44, %s1275_s18 }
 0x391   :  { %858 = vrot.lane.b32.xlu1 %v1570_v43, %s1275_s18 }
 0x395   :  { %864 = vrot.lane.b32.xlu1 %v1588_v48, %s1275_s18 }
 0x399   :  { %902 = vrot.lane.b32.xlu1 %v1578_v46, %s1277_s19 }
 0x39d   :  { %906 = vrot.lane.b32.xlu1 %v1588_v48, %s1277_s19 }
 0x3c7   :  { %v607_v49 = vpop.permute.xlu0 %606  ;;  %v603_v50 = vpop.permute.xlu1 %602 }
 0x3cb   :  { %v687_v51 = vpop.permute.xlu0 %686  ;;  %v605_v52 = vpop.permute.xlu1 %604 }
 0x3cc   :  { %v612_v58 = vsel %vm44_vm1, %v603_v50, %v605_v52  ;;  %v611_v20 = vsel %vm44_vm1, %v605_v52, %v607_v49 }
 0x3cd   :  { %v637_v61 = vmul.f32 %v623_v56, %v612_v58  ;;  %v638_v26 = vmul.f32 %v627_v11, %v611_v20  ;;  %v711_v56 = vrot.slane %v1240_v35, %v1427_v18  ;;  %v753_v58 = vrot.slane %v1241_v31, %v1427_v18  ;;  %v1243_v35 = vld [vmem:[%s1812_s1 + $0x6] ss:$8 sm:$0xf] }
 0x3cf   :  { %v729_v54 = vpop.permute.xlu0 %728  ;;  %v645_v55 = vpop.permute.xlu1 %644 }
 0x3d3   :  { %v647_v59 = vpop.permute.xlu1 %646  ;;  %v693_v62 = vpop.permute.xlu0 %692 }
 0x3d4   :  { %v654_v60 = vsel %vm87_vm0, %v645_v55, %v647_v59 }
 0x3d5   :  { %v679_v0 = vmul.f32 %v665_v57, %v654_v60 }
 0x3d7   :  { %v609_v2 = vpop.permute.xlu1 %608  ;;  %v981_v63 = vpack.c.bf16 %v679_v0, %v637_v61  ;;  %v691_v9 = vpop.permute.xlu0 %690  ;;  %v757_v0 = vrot.slane %v1241_v31, %v1429_v19 }
 0x3d8   :  { %v613_v6 = vsel %vm44_vm1, %v609_v2, %v603_v50  ;;  %v610_v21 = vsel %vm44_vm1, %v607_v49, %v609_v2  ;;  %v745_v49 = vrot.slane %v1241_v31, %v1421_v13  ;;  %v697_v50 = vsel %vm131_vm2, %v693_v62, %v687_v51 }
 0x3d9   :  { %1020 = vmatprep.subr.bf16.mxu0 %v981_v63  ;;  %v636_v15 = vmul.f32 %v619_v3, %v613_v6  ;;  %v639_v27 = vmul.f32 %v631_v12, %v610_v21  ;;  %v694_v60 = vsel %vm131_vm2, %v691_v9, %v693_v62 }
 0x3da   :  { %v723_v6 = vmul.f32 %v715_v53, %v694_v60  ;;  %v1245_v60 = vld [vmem:[%s1812_s1 + $0x20] ss:$8 sm:$0xf] }
 0x3db   :  { %v651_v10 = vpop.permute.xlu1 %650  ;;  %v777_v28 = vpop.permute.xlu0 %776 }
 0x3dc   :  { %v655_v14 = vsel %vm87_vm0, %v651_v10, %v645_v55  ;;  %v1242_v55 = vld [vmem:[%s1812_s1 + $0x5] ss:$8 sm:$0xf] }
 0x3dd   :  { %v678_v16 = vmul.f32 %v661_v5, %v655_v14  ;;  %v791_v63 = vrot.slane %v1242_v55, %v1421_v13  ;;  %v795_v62 = vrot.slane %v1242_v55, %v1413_v8 }
 0x3df   :  { %v980_v22 = vpack.c.bf16 %v678_v16, %v636_v15  ;;  %v649_v23 = vpop.permute.xlu1 %648  ;;  %v775_v39 = vpop.permute.xlu0 %774 }
 0x3e0   :  { %v652_v24 = vsel %vm87_vm0, %v649_v23, %v651_v10  ;;  %v653_v25 = vsel %vm87_vm0, %v647_v59, %v649_v23  ;;  %v720_v59 = vmul.f32 %v703_v42, %v697_v50  ;;  %v784_v11 = vsel %vm223_vm4, %v775_v39, %v777_v28 }
 0x3e1   :  { %v680_v29 = vmul.f32 %v669_v4, %v653_v25  ;;  %v681_v30 = vmul.f32 %v673_v17, %v652_v24  ;;  %1021 = vmatpush1.bf16.msra.mxu0 %v980_v22  ;;  %v808_v20 = vmul.f32 %v791_v63, %v784_v11  ;;  %v799_v23 = vrot.slane %v1242_v55, %v1427_v18 }
 0x3e2   :  { %v803_v24 = vrot.slane %v1242_v55, %v1429_v19 }
 0x3e3   :  { %v982_v32 = vpack.c.bf16 %v680_v29, %v638_v26  ;;  %v689_v33 = vpop.permute.xlu1 %688  ;;  %v983_v34 = vpack.c.bf16 %v681_v30, %v639_v27  ;;  %v988_v27 = vpack.c.bf16 %v808_v20, %v1570_v43 }
 0x3e4   :  { %v696_v38 = vsel %vm131_vm2, %v687_v51, %v689_v33  ;;  %v819_v51 = vpop.permute.xlu0 %818  ;;  %v695_v2 = vsel %vm131_vm2, %v689_v33, %v691_v9  ;;  %v1244_v33 = vld [vmem:[%s1812_s1 + $0x7] ss:$8 sm:$0xf] }
 0x3e5   :  { %1063 = vmatprep.subr.bf16.mxu1 %v983_v34  ;;  %v721_v45 = vmul.f32 %v707_v36, %v696_v38  ;;  %v722_v12 = vmul.f32 %v711_v56, %v695_v2  ;;  %v837_v36 = vrot.slane %v1243_v35, %v1413_v8 }
 0x3e6   :  { %1064 = vmatpush1.bf16.msra.mxu1 %v982_v32 }
 0x3e7   :  { %v731_v40 = vpop.permute.xlu1 %730 }
 0x3e8   :  { %v738_v41 = vsel %vm175_vm3, %v729_v54, %v731_v40  ;;  %v861_v9 = vpop.permute.xlu0 %860 }
 0x3e9   :  { %v763_v47 = vmul.f32 %v749_v37, %v738_v41  ;;  %v879_v37 = vrot.slane %v1244_v33, %v1413_v8 }
 0x3eb   :  { %v735_v52 = vpop.permute.xlu1 %734  ;;  %v985_v1 = vpack.c.bf16 %v763_v47, %v721_v45  ;;  %v875_v45 = vrot.slane %v1244_v33, %v1421_v13 }
 0x3ec   :  { %v739_v57 = vsel %vm175_vm3, %v735_v52, %v729_v54  ;;  %v817_v31 = vpop.permute.xlu0 %816 }
 0x3ed   :  { %v762_v61 = vmul.f32 %v745_v49, %v739_v57  ;;  %1022 = vmatprep.subr.bf16.mxu0 %v985_v1  ;;  %v826_v47 = vsel %vm267_vm5, %v817_v31, %v819_v51  ;;  %v841_v1 = vrot.slane %v1243_v35, %v1427_v18 }
 0x3ef   :  { %v984_v3 = vpack.c.bf16 %v762_v61, %v720_v59  ;;  %v733_v5 = vpop.permute.xlu1 %732  ;;  %v887_v59 = vrot.slane %v1244_v33, %v1429_v19 }
 0x3f0   :  { %v736_v54 = vsel %vm175_vm3, %v733_v5, %v735_v52  ;;  %v737_v10 = vsel %vm175_vm3, %v731_v40, %v733_v5  ;;  %v845_v52 = vrot.slane %v1243_v35, %v1429_v19  ;;  %v917_v5 = vrot.slane %v1245_v60, %v1421_v13 }
 0x3f1   :  { %v764_v14 = vmul.f32 %v753_v58, %v737_v10  ;;  %v765_v15 = vmul.f32 %v757_v0, %v736_v54  ;;  %1023 = vmatpush1.bf16.msra.mxu0 %v984_v3  ;;  %v883_v58 = vrot.slane %v1244_v33, %v1427_v18 }
 0x3f3   :  { %v986_v16 = vpack.c.bf16 %v764_v14, %v722_v12  ;;  %v779_v4 = vpop.permute.xlu1 %778  ;;  %v987_v17 = vpack.c.bf16 %v765_v15, %v723_v6  ;;  %v921_v6 = vrot.slane %v1245_v60, %v1413_v8  ;;  %v925_v8 = vrot.slane %v1245_v60, %v1427_v18  ;;  %v1262_v18 = vld [vmem:[%s1816_s5] sm:$0xff]  }
 0x3f4   :  { %v783_v21 = vsel %vm223_vm4, %v777_v28, %v779_v4 }
 0x3f5   :  { %v809_v22 = vmul.f32 %v795_v62, %v783_v21  ;;  %1065 = vmatprep.subr.bf16.mxu1 %v987_v17 }
 0x3f6   :  { %1066 = vmatpush1.bf16.msra.mxu1 %v986_v16 }
 0x3f7   :  { %v781_v25 = vpop.permute.xlu1 %780  ;;  %v989_v26 = vpack.c.bf16 %v809_v22, %v1578_v46 }
 0x3f8   :  { %v782_v29 = vsel %vm223_vm4, %v779_v4, %v781_v25  ;;  %v785_v30 = vsel %vm223_vm4, %v781_v25, %v775_v39  ;;  %v823_v39 = vpop.permute.xlu0 %822 }
 0x3f9   :  { %v810_v28 = vmul.f32 %v799_v23, %v782_v29  ;;  %v811_v32 = vmul.f32 %v803_v24, %v785_v30  ;;  %1024 = vmatprep.subr.bf16.mxu0 %v989_v26 }
 0x3fa   :  { %1025 = vmatpush1.bf16.msra.mxu0 %v988_v27 }
 0x3fb   :  { %v990_v34 = vpack.c.bf16 %v810_v28, %v1572_v44  ;;  %v821_v46 = vpop.permute.xlu1 %820  ;;  %v991_v43 = vpack.c.bf16 %v811_v32, %v1588_v48  ;;  %v833_v48 = vrot.slane %v1243_v35, %v1421_v13  ;;  %v929_v13 = vrot.slane %v1245_v60, %v1429_v19 }
 0x3fc   :  { %v825_v38 = vsel %vm267_vm5, %v819_v51, %v821_v46  ;;  %v901_v56 = vpop.permute.xlu0 %900  ;;  %v827_v51 = vsel %vm267_vm5, %v823_v39, %v817_v31  ;;  %v824_v61 = vsel %vm267_vm5, %v821_v46, %v823_v39 }
 0x3fd   :  { %1067 = vmatprep.subr.bf16.mxu1 %v991_v43  ;;  %v851_v41 = vmul.f32 %v837_v36, %v825_v38  ;;  %v850_v55 = vmul.f32 %v833_v48, %v826_v47  ;;  %v853_v54 = vmul.f32 %v845_v52, %v827_v51  ;;  %v852_v10 = vmul.f32 %v841_v1, %v824_v61 }
 0x3fe   :  { %1068 = vmatpush1.bf16.msra.mxu1 %v990_v34 }
 0x3ff   :  { %v863_v40 = vpop.permute.xlu1 %862 }
 0x400   :  { %v867_v44 = vsel %vm311_vm6, %v861_v9, %v863_v40  ;;  %v905_v12 = vpop.permute.xlu0 %904 }
 0x401   :  { %v893_v42 = vmul.f32 %v879_v37, %v867_v44 }
 0x403   :  { %v859_v49 = vpop.permute.xlu1 %858  ;;  %v993_v50 = vpack.c.bf16 %v893_v42, %v851_v41 }
 0x404   :  { %v868_v53 = vsel %vm311_vm6, %v859_v49, %v861_v9 }
 0x405   :  { %v892_v57 = vmul.f32 %v875_v45, %v868_v53  ;;  %1026 = vmatprep.subr.bf16.mxu0 %v993_v50 }
 0x407   :  { %v992_v0 = vpack.c.bf16 %v892_v57, %v850_v55  ;;  %v865_v2 = vpop.permute.xlu1 %864 }
 0x408   :  { %v866_v63 = vsel %vm311_vm6, %v863_v40, %v865_v2  ;;  %v869_v3 = vsel %vm311_vm6, %v865_v2, %v859_v49 }
 0x409   :  { %v894_v62 = vmul.f32 %v883_v58, %v866_v63  ;;  %v895_v11 = vmul.f32 %v887_v59, %v869_v3  ;;  %1027 = vmatpush1.bf16.msra.mxu0 %v992_v0 }
 0x40b   :  { %v994_v14 = vpack.c.bf16 %v894_v62, %v852_v10  ;;  %v903_v15 = vpop.permute.xlu1 %902  ;;  %v995_v9 = vpack.c.bf16 %v895_v11, %v853_v54 }
 0x40c   :  { %v909_v16 = vsel %vm355_vm7, %v903_v15, %v905_v12  ;;  %v910_v4 = vsel %vm355_vm7, %v901_v56, %v903_v15 }
 0x40d   :  { %v934_v17 = vmul.f32 %v917_v5, %v910_v4  ;;  %v935_v20 = vmul.f32 %v921_v6, %v909_v16  ;;  %1069 = vmatprep.subr.bf16.mxu1 %v995_v9  ;;  %v1146_v16 = vld [vmem:[%s1817_s6] sm:$0xff] }
 0x40e   :  { %1070 = vmatpush1.bf16.msra.mxu1 %v994_v14 }
 0x40f   :  { %v996_v21 = vpack.c.bf16 %v934_v17, %v934_v17  ;;  %v997_v22 = vpack.c.bf16 %v935_v20, %v935_v20  ;;  %v907_v23 = vpop.permute.xlu1 %906  ;;  %v1147_v20 = vld [vmem:[%s1817_s6 + $0x8] sm:$0xff] }
 0x410   :  { %v908_v24 = vsel %vm355_vm7, %v905_v12, %v907_v23  ;;  %v911_v25 = vsel %vm355_vm7, %v907_v23, %v901_v56 }
 0x411   :  { %v936_v26 = vmul.f32 %v925_v8, %v908_v24  ;;  %v937_v27 = vmul.f32 %v929_v13, %v911_v25  ;;  %1247 = vmatprep.subr.msk.bf16.mxu0 %vm452_vm8, %v997_v22  ;;  %v1009_v29 = vsel %vm452_vm8, %v996_v21, 0  ;;  %v1172_v13 = vld [vmem:[%s1818_s7] sm:$0xff]  ;;  %v1173_v22 = vld [vmem:[%s1818_s7 + $0x8] sm:$0xff] }
 0x412   :  { %1029 = vmatpush1.bf16.msra.mxu0 %v1009_v29 }
 0x413   :  { %v998_v19 = vpack.c.bf16 %v936_v26, %v936_v26  ;;  %v999_v30 = vpack.c.bf16 %v937_v27, %v937_v27 }
 0x415   :  { %1248 = vmatmul.mubr.msk.bf16.vlgmr.msra.gmra.mrb[4].mxu0 %vm448_vm9, %v1262_v18  ;;  %1249 = vmatprep.subr.msk.bf16.mxu1 %vm452_vm8, %v999_v30  ;;  %v1015_v7 = vsel %vm452_vm8, %v998_v19, 0 }
 0x416   :  { %1072 = vmatpush1.bf16.msra.mxu1 %v1015_v7 }
 0x419   :  { %1250 = vmatmul.mubr.msk.bf16.vlgmr.msra.gmra.mrb[4].mxu1 %vm448_vm9, %v1262_v18 }
 0x4e8   :  { %v1054_v31 = vpop.f32.mrb[4].mxu0 }
 0x4e9   :  { %v1056_v28 = vpop.f32.mrb[5].mxu0 }
 0x4ea   :  { %v1106_v32 = vadd.f32 %v1056_v28, %v1054_v31  ;;  %v1058_v33 = vpop.f32.mrb[6].mxu0 }
 0x4eb   :  { %v1060_v34 = vpop.f32.mrb[7].mxu0 }
 0x4ec   :  { %v1111_v46 = vadd.f32 %v1060_v34, %v1058_v33  ;;  %v1097_v43 = vpop.f32.mrb[4].mxu1 }
 0x4ed   :  { %v1107_v35 = vadd.f32 %v1106_v32, %v1097_v43  ;;  %v1099_v36 = vpop.f32.mrb[5].mxu1 }
 0x4ee   :  { %v1101_v37 = vpop.f32.mrb[6].mxu1 }
 0x4ef   :  { %v1112_v38 = vadd.f32 %v1111_v46, %v1101_v37  ;;  %v1103_v39 = vpop.f32.mrb[7].mxu1  ;;  %v1108_v40 = vadd.f32 %v1107_v35, %v1099_v36 }
 0x4f1   :  { %v1113_v44 = vadd.f32 %v1112_v38, %v1103_v39  ;;  %1109 = vadd.xlane.f32.xlu0 %v1108_v40 }
 0x4f3   :  { %1114 = vadd.xlane.f32.xlu1 %v1113_v44 }
 0x57e   :  { %v1110_v48 = vpop.xlane.xlu0 %1109 }
 0x57f   :  { %v1116_v41 = vmul.f32 0.001953125, %v1110_v48 }
 0x580   :  { %v1115_v42 = vpop.xlane.xlu1 %1114 }
 0x581   :  { %v1118_v45 = vsub.f32 %v1054_v31, %v1116_v41  ;;  %v1119_v47 = vsub.f32 %v1056_v28, %v1116_v41  ;;  %v1117_v49 = vmul.f32 0.001953125, %v1115_v42  ;;  %v1120_v50 = vsub.f32 %v1097_v43, %v1116_v41 }
 0x582   :  { %v1121_v52 = vsub.f32 %v1099_v36, %v1116_v41 }
 0x583   :  { %v1122_v1 = vsub.f32 %v1058_v33, %v1117_v49  ;;  %v1123_v53 = vsub.f32 %v1060_v34, %v1117_v49  ;;  %v1126_v55 = vmul.f32 %v1118_v45, %v1118_v45  ;;  %v1127_v56 = vmul.f32 %v1119_v47, %v1119_v47 }
 0x584   :  { %v1124_v57 = vsub.f32 %v1101_v37, %v1117_v49  ;;  %v1128_v58 = vmul.f32 %v1120_v50, %v1120_v50  ;;  %v1129_v61 = vmul.f32 %v1121_v52, %v1121_v52  ;;  %v1125_v2 = vsub.f32 %v1103_v39, %v1117_v49 }
 0x585   :  { %v1134_v59 = vadd.f32 %v1127_v56, %v1126_v55  ;;  %v1130_v60 = vmul.f32 %v1122_v1, %v1122_v1  ;;  %v1131_v51 = vmul.f32 %v1123_v53, %v1123_v53 }
 0x586   :  { %v1132_v63 = vmul.f32 %v1124_v57, %v1124_v57  ;;  %v1133_v54 = vmul.f32 %v1125_v2, %v1125_v2 }
 0x587   :  { %v1135_v0 = vadd.f32 %v1134_v59, %v1128_v58  ;;  %v1139_v3 = vadd.f32 %v1131_v51, %v1130_v60 }
 0x589   :  { %v1136_v5 = vadd.f32 %v1135_v0, %v1129_v61  ;;  %v1140_v6 = vadd.f32 %v1139_v3, %v1132_v63 }
 0x58b   :  { %1137 = vadd.xlane.f32.xlu0 %v1136_v5  ;;  %v1141_v10 = vadd.f32 %v1140_v6, %v1133_v54 }
 0x58f   :  { %1142 = vadd.xlane.f32.xlu0 %v1141_v10 }
 0x618   :  { %v1138_v62 = vpop.xlane.xlu0 %1137 }
 0x619   :  { %v1144_v11 = vmul.f32 0.001953125, %v1138_v62 }
 0x61b   :  { %v1148_v12 = vadd.f32 1e-05, %v1144_v11 }
 0x61c   :  { %v1143_v14 = vpop.xlane.xlu0 %1142 }
 0x61d   :  { %1265 = vrsqrt.f32 %v1148_v12  ;;  %v1145_v15 = vmul.f32 0.001953125, %v1143_v14 }
 0x61f   :  { %v1149_v9 = vadd.f32 1e-05, %v1145_v15 }
 0x621   :  { %1267 = vrsqrt.f32 %v1149_v9 }
 0x627   :  { %v1266_v4 = vpop.eup %1265 }
 0x628   :  { %v1152_v17 = vmul.f32 %v1266_v4, %v1146_v16 }
 0x62a   :  { %1156 = vperm.xlu1 %1261, %v1152_v17  }
 0x62b   :  { %v1268_v8 = vpop.eup %1267 }
 0x62c   :  { %v1153_v21 = vmul.f32 %v1268_v8, %v1147_v20 }
 0x62e   :  { %1176 = vperm.xlu1 %1261, %v1172_v13   ;;  %1161 = vperm.xlu0 %1260, %v1153_v21  }
 0x632   :  { %1181 = vperm.xlu1 %1261, %v1173_v22  }
 0x6a9   :  { %v1157_v23 = vpop.permute.xlu1 %1156 }
 0x6aa   :  { %v1164_v24 = vmul.f32 %v1157_v23, %v1118_v45  ;;  %v1165_v25 = vmul.f32 %v1157_v23, %v1119_v47  ;;  %v1166_v26 = vmul.f32 %v1157_v23, %v1120_v50  ;;  %v1167_v27 = vmul.f32 %v1157_v23, %v1121_v52 }
 0x6ad   :  { %v1162_v29 = vpop.permute.xlu0 %1161  ;;  %v1177_v18 = vpop.permute.xlu1 %1176 }
 0x6ae   :  { %v1184_v19 = vadd.f32 %v1177_v18, %v1164_v24  ;;  %v1185_v30 = vadd.f32 %v1177_v18, %v1165_v25  ;;  %v1186_v7 = vadd.f32 %v1177_v18, %v1166_v26  ;;  %v1187_v31 = vadd.f32 %v1177_v18, %v1167_v27 }
 0x6af   :  { %v1168_v28 = vmul.f32 %v1162_v29, %v1122_v1  ;;  %v1169_v32 = vmul.f32 %v1162_v29, %v1123_v53  ;;  %v1170_v33 = vmul.f32 %v1162_v29, %v1124_v57  ;;  %v1171_v34 = vmul.f32 %v1162_v29, %v1125_v2 }
 0x6b0   :  { %vm1192_vm14 = vcmp.ge.f32.partialorder %v1184_v19, 0.0  ;;  %vm1193_vm15 = vcmp.ge.f32.partialorder %v1185_v30, 0.0  ;;  %vm1194_vm0 = vcmp.ge.f32.partialorder %v1186_v7, 0.0  ;;  %vm1195_vm1 = vcmp.ge.f32.partialorder %v1187_v31, 0.0 }
 0x6b1   :  { %v1182_v46 = vpop.permute.xlu1 %1181  ;;  %v1200_v43 = vmul.f32 0.1, %v1184_v19  ;;  %v1201_v35 = vmul.f32 0.1, %v1185_v30  ;;  %v1202_v36 = vmul.f32 0.1, %v1186_v7 }
 0x6b2   :  { %v1188_v37 = vadd.f32 %v1182_v46, %v1168_v28  ;;  %v1203_v38 = vmul.f32 0.1, %v1187_v31  ;;  %v1189_v39 = vadd.f32 %v1182_v46, %v1169_v32  ;;  %v1190_v40 = vadd.f32 %v1182_v46, %v1170_v33 }
 0x6b3   :  { %v1191_v44 = vadd.f32 %v1182_v46, %v1171_v34  ;;  %v1208_v48 = vsel %vm1192_vm14, %v1184_v19, %v1200_v43  ;;  %v1209_v41 = vsel %vm1193_vm15, %v1185_v30, %v1201_v35  ;;  %v1210_v42 = vsel %vm1194_vm0, %v1186_v7, %v1202_v36 }
 0x6b4   :  { %vm1196_vm2 = vcmp.ge.f32.partialorder %v1188_v37, 0.0  ;;  %v1211_v45 = vsel %vm1195_vm1, %v1187_v31, %v1203_v38  ;;  %1216 = vst [vmem:[%s1819_s8] sm:$0xff] %v1208_v48  ;;  %1217 = vst [vmem:[%s1819_s8 + $0x8] sm:$0xff] %v1209_v41  ;;  %vm1197_vm3 = vcmp.ge.f32.partialorder %v1189_v39, 0.0  ;;  %vm1198_vm4 = vcmp.ge.f32.partialorder %v1190_v40, 0.0 }
 0x6b5   :  { %1218 = vst [vmem:[%s1819_s8 + $0x10] sm:$0xff] %v1210_v42  ;;  %vm1199_vm5 = vcmp.ge.f32.partialorder %v1191_v44, 0.0  ;;  %1219 = vst [vmem:[%s1819_s8 + $0x18] sm:$0xff] %v1211_v45  ;;  %v1204_v47 = vmul.f32 0.1, %v1188_v37 }
 0x6b6   :  { %v1205_v49 = vmul.f32 0.1, %v1189_v39  ;;  %v1206_v50 = vmul.f32 0.1, %v1190_v40  ;;  %v1207_v52 = vmul.f32 0.1, %v1191_v44 }
 0x6b7   :  { %v1212_v1 = vsel %vm1196_vm2, %v1188_v37, %v1204_v47 }
 0x6b8   :  { %v1213_v53 = vsel %vm1197_vm3, %v1189_v39, %v1205_v49  ;;  %v1214_v55 = vsel %vm1198_vm4, %v1190_v40, %v1206_v50  ;;  %v1215_v56 = vsel %vm1199_vm5, %v1191_v44, %v1207_v52  ;;  %1220 = vst [vmem:[%s1819_s8 + $0x20] sm:$0xff] %v1212_v1 }
 0x6b9   :  { %1221 = vst [vmem:[%s1819_s8 + $0x28] sm:$0xff] %v1213_v53  ;;  %1222 = vst [vmem:[%s1819_s8 + $0x30] sm:$0xff] %v1214_v55 }
 0x6ba   :  { %1223 = vst [vmem:[%s1819_s8 + $0x38] sm:$0xff] %v1215_v56 }

</bundles_post_ra>
